<compile_context>
chip_gen: v5e
topology: v5e:2x2
jax: 0.10.0
libtpu: 0.0.40
codegen_flags: <defaults>
</compile_context>

<pallas_src>
import functools

import jax
import jax.numpy as jnp
from jax.experimental import pallas as pl
from jax.experimental.pallas import tpu as pltpu


def _round_up(x, m):
    return ((x + m - 1) // m) * m


# --------------------------------------------------------------------------- #
# Kernels
# --------------------------------------------------------------------------- #
def _stats_update(y, m, gamma_ref, beta_ref, scale_ref, shift_ref,
                  sum_ref, sumsq_ref, inv_m, eps):
    """Accumulate per-channel sum / sumsq of y; finalize BN scale/shift on the
    last grid step.  (Single-traversal E[y^2]-mean^2 variance, biased, f32.)"""
    @pl.when(m == 0)
    def _init():
        sum_ref[...] = jnp.zeros_like(sum_ref)
        sumsq_ref[...] = jnp.zeros_like(sumsq_ref)

    # Padded rows of the patches are zero, so they contribute nothing; inv_m is
    # 1/real_M.  (Sublane reductions; could be moved to the MXU via ones@y if a
    # profile ever shows this pass VALU/XLU-limited — it is HBM-bound here.)
    sum_ref[...] += jnp.sum(y, axis=0, keepdims=True)
    sumsq_ref[...] += jnp.sum(y * y, axis=0, keepdims=True)

    @pl.when(m == pl.num_programs(0) - 1)
    def _finalize():
        mean = sum_ref[...] * inv_m
        var = sumsq_ref[...] * inv_m - mean * mean      # biased var (PyTorch BN)
        sc = gamma_ref[...] * jax.lax.rsqrt(var + eps)
        scale_ref[...] = sc
        shift_ref[...] = beta_ref[...] - mean * sc


def _conv_stats_kernel(p_ref, w_ref, gamma_ref, beta_ref,
                       scale_ref, shift_ref, sum_ref, sumsq_ref,
                       *, inv_m, eps):
    """Pass 1 (no y intermediate): conv tile + BN-stat accumulation."""
    y = jnp.dot(p_ref[...], w_ref[...], preferred_element_type=jnp.float32)
    _stats_update(y, pl.program_id(0), gamma_ref, beta_ref,
                  scale_ref, shift_ref, sum_ref, sumsq_ref, inv_m, eps)


def _conv_stats_y_kernel(p_ref, w_ref, gamma_ref, beta_ref,
                         y_ref, scale_ref, shift_ref, sum_ref, sumsq_ref,
                         *, inv_m, eps):
    """Pass 1 (wide-K plan): also stream the unnormalized conv output y."""
    y = jnp.dot(p_ref[...], w_ref[...], preferred_element_type=jnp.float32)
    y_ref[...] = y
    _stats_update(y, pl.program_id(0), gamma_ref, beta_ref,
                  scale_ref, shift_ref, sum_ref, sumsq_ref, inv_m, eps)


def _conv_apply_kernel(p_ref, w_ref, scale_ref, shift_ref, alpha_ref, o_ref):
    """Pass 2 (recompute plan): redo the cheap bf16 matmul, BN affine, PReLU."""
    y = jnp.dot(p_ref[...], w_ref[...], preferred_element_type=jnp.float32)
    z = y * scale_ref[...] + shift_ref[...]
    alpha = alpha_ref[0, 0]                              # PReLU scalar from SMEM
    o_ref[...] = jnp.where(z > 0.0, z, alpha * z)


def _bn_prelu_kernel(y_ref, scale_ref, shift_ref, alpha_ref, o_ref):
    """Pass 2 (wide-K plan): pure elementwise BN affine + PReLU over stored y."""
    z = y_ref[...] * scale_ref[...] + shift_ref[...]
    alpha = alpha_ref[0, 0]
    o_ref[...] = jnp.where(z > 0.0, z, alpha * z)


# --------------------------------------------------------------------------- #
# Wrapper
# --------------------------------------------------------------------------- #
def basic_conv_prelu(x, weight, gamma, beta, alpha, *, stride=1, padding=0,
                     dilation=1, groups=1, eps=1e-5, tile_m=2048):
    """x: (N, Cin, H, W) f32; weight: (Cout, Cin, kh, kw); gamma/beta: (Cout,);
    alpha: scalar PReLU slope.  Returns (N, Cout, Hout, Wout) f32 (NCHW)."""
    if dilation != 1 or groups != 1:
        raise NotImplementedError("dilation/groups != 1 not needed for this module")
    N, C, H, W = x.shape
    Cout, Cin, kh, kw = weight.shape
    assert Cin == C

    Hout = (H + 2 * padding - kh) // stride + 1
    Wout = (W + 2 * padding - kw) // stride + 1
    M = N * Hout * Wout
    K = C * kh * kw

    # Lane alignment.  K and Cout stay single full-extent blocks (no K/N grid
    # axis), so Mosaic can drive the MXU at its native width (256-wide on
    # v6e/v7x, 128 on v5e) without extra HBM padding on our side.
    K_pad = _round_up(K, 128)
    C_pad = _round_up(Cout, 128)

    # M tiling with an explicit VMEM budget: double-buffered bf16 patch stream
    # plus f32 y/out stream per row, kept well inside the 32 MiB scoped limit
    # (safe on v7x's 64 MiB physical VMEM).  Resident weight/scale/shift blocks
    # are tiny at these shapes so no pl.Buffered(1) single-buffering is needed.
    stream_row_bytes = 2 * (K_pad * 2 + 2 * C_pad * 4)
    tm_cap = max(8, ((20 * 1024 * 1024) // stream_row_bytes) // 8 * 8)
    TM = _round_up(min(tile_m, _round_up(M, 8), tm_cap), 8)
    M_pad = _round_up(M, TM)
    MT = M_pad // TM

    # --- im2col (wrapper glue, plain JAX); fed to the kernel in bf16 ---
    xp = jnp.pad(x, ((0, 0), (0, 0), (padding, padding), (padding, padding)))
    taps = []
    for ki in range(kh):
        for kj in range(kw):
            taps.append(
                xp[:, :, ki:ki + Hout * stride:stride, kj:kj + Wout * stride:stride])
    # (T,N,C,Ho,Wo) -> (N,Ho,Wo,C,T) -> (M,K); feature order (c, ki, kj) == PyTorch
    patches = jnp.stack(taps, axis=0).transpose(1, 3, 4, 2, 0).reshape(M, K)
    patches = jnp.pad(patches.astype(jnp.bfloat16),
                      ((0, M_pad - M), (0, K_pad - K)))

    # weight (Cout, Cin, kh, kw) -> (K, Cout) -> (K_pad, C_pad), bf16
    w2d = jnp.pad(weight.reshape(Cout, K).T.astype(jnp.bfloat16),
                  ((0, K_pad - K), (0, C_pad - Cout)))
    # Padded channels: gamma=0 -> scale=0, shift=0 -> harmless (sliced off).
    gamma_p = jnp.pad(gamma.astype(jnp.float32), (0, C_pad - Cout)).reshape(1, C_pad)
    beta_p = jnp.pad(beta.astype(jnp.float32), (0, C_pad - Cout)).reshape(1, C_pad)
    alpha2d = jnp.asarray(alpha, jnp.float32).reshape(1, 1)

    vmem_limit = 32 * 1024 * 1024
    inv_m = 1.0 / float(M)
    matmul_flops = 2 * M_pad * K_pad * C_pad

    patch_spec = pl.BlockSpec((TM, K_pad), lambda m: (m, 0))
    weight_spec = pl.BlockSpec((K_pad, C_pad), lambda m: (0, 0))
    small_spec = pl.BlockSpec((1, C_pad), lambda m: (0, 0))
    y_spec = pl.BlockSpec((TM, C_pad), lambda m: (m, 0))
    smem_spec = pl.BlockSpec(memory_space=pltpu.MemorySpace.SMEM)

    # Shape-dependent plan: when the contraction is much wider than the output
    # channels, streaming the unnormalized y once beats re-reading the patches.
    use_y_intermediate = K_pad > 2 * C_pad

    if use_y_intermediate:
        stats_kernel = functools.partial(_conv_stats_y_kernel,
                                         inv_m=inv_m, eps=float(eps))
        y_flat, scale, shift = pl.pallas_call(
            stats_kernel,
            out_shape=(jax.ShapeDtypeStruct((M_pad, C_pad), jnp.float32),
                       jax.ShapeDtypeStruct((1, C_pad), jnp.float32),
                       jax.ShapeDtypeStruct((1, C_pad), jnp.float32)),
            grid_spec=pltpu.PrefetchScalarGridSpec(
                num_scalar_prefetch=0, grid=(MT,),
                in_specs=[patch_spec, weight_spec, small_spec, small_spec],
                out_specs=[y_spec, small_spec, small_spec],
                scratch_shapes=[pltpu.VMEM((1, C_pad), jnp.float32),
                                pltpu.VMEM((1, C_pad), jnp.float32)]),
            compiler_params=pltpu.CompilerParams(
                dimension_semantics=("arbitrary",),   # running BN-stat accumulator
                vmem_limit_bytes=vmem_limit),
            cost_estimate=pl.CostEstimate(
                flops=matmul_flops + 3 * M_pad * C_pad, transcendentals=C_pad,
                bytes_accessed=2 * M_pad * K_pad + 2 * K_pad * C_pad
                + 4 * M_pad * C_pad + 16 * C_pad),
        )(patches, w2d, gamma_p, beta_p)

        out_flat = pl.pallas_call(
            _bn_prelu_kernel,
            out_shape=jax.ShapeDtypeStruct((M_pad, C_pad), jnp.float32),
            grid_spec=pltpu.PrefetchScalarGridSpec(
                num_scalar_prefetch=0, grid=(MT,),
                in_specs=[y_spec, small_spec, small_spec, smem_spec],
                out_specs=y_spec),
            compiler_params=pltpu.CompilerParams(
                dimension_semantics=("parallel",),    # megacore-shardable on v7x
                vmem_limit_bytes=vmem_limit),
            cost_estimate=pl.CostEstimate(
                flops=3 * M_pad * C_pad, transcendentals=0,
                bytes_accessed=8 * M_pad * C_pad + 8 * C_pad),
        )(y_flat, scale, shift, alpha2d)
    else:
        stats_kernel = functools.partial(_conv_stats_kernel,
                                         inv_m=inv_m, eps=float(eps))
        scale, shift = pl.pallas_call(
            stats_kernel,
            out_shape=(jax.ShapeDtypeStruct((1, C_pad), jnp.float32),
                       jax.ShapeDtypeStruct((1, C_pad), jnp.float32)),
            grid_spec=pltpu.PrefetchScalarGridSpec(
                num_scalar_prefetch=0, grid=(MT,),
                in_specs=[patch_spec, weight_spec, small_spec, small_spec],
                out_specs=[small_spec, small_spec],
                scratch_shapes=[pltpu.VMEM((1, C_pad), jnp.float32),
                                pltpu.VMEM((1, C_pad), jnp.float32)]),
            compiler_params=pltpu.CompilerParams(
                dimension_semantics=("arbitrary",),   # running BN-stat accumulator
                vmem_limit_bytes=vmem_limit),
            cost_estimate=pl.CostEstimate(
                flops=matmul_flops + 3 * M_pad * C_pad, transcendentals=C_pad,
                bytes_accessed=2 * M_pad * K_pad + 2 * K_pad * C_pad + 16 * C_pad),
        )(patches, w2d, gamma_p, beta_p)

        out_flat = pl.pallas_call(
            _conv_apply_kernel,
            out_shape=jax.ShapeDtypeStruct((M_pad, C_pad), jnp.float32),
            grid_spec=pltpu.PrefetchScalarGridSpec(
                num_scalar_prefetch=0, grid=(MT,),
                in_specs=[patch_spec, weight_spec, small_spec, small_spec, smem_spec],
                out_specs=y_spec),
            compiler_params=pltpu.CompilerParams(
                dimension_semantics=("parallel",),    # megacore-shardable on v7x
                vmem_limit_bytes=vmem_limit),
            cost_estimate=pl.CostEstimate(
                flops=matmul_flops + 3 * M_pad * C_pad, transcendentals=0,
                bytes_accessed=2 * M_pad * K_pad + 2 * K_pad * C_pad
                + 4 * M_pad * C_pad + 8 * C_pad),
        )(patches, w2d, scale, shift, alpha2d)

    # (M_pad, C_pad) -> strip padding -> (N, Ho, Wo, Cout) -> NCHW
    return out_flat[:M, :Cout].reshape(N, Hout, Wout, Cout).transpose(0, 3, 1, 2)


# --------------------------------------------------------------------------- #
# Reference & self-test
# --------------------------------------------------------------------------- #
def _reference(x, weight, gamma, beta, alpha, stride, padding, eps=1e-5):
    y = jax.lax.conv_general_dilated(
        x, weight, window_strides=(stride, stride),
        padding=((padding, padding), (padding, padding)),
        dimension_numbers=("NCHW", "OIHW", "NCHW"))
    mean = jnp.mean(y, axis=(0, 2, 3), keepdims=True)
    var = jnp.mean((y - mean) ** 2, axis=(0, 2, 3), keepdims=True)
    y = (y - mean) * jax.lax.rsqrt(var + eps)
    y = y * gamma.reshape(1, -1, 1, 1) + beta.reshape(1, -1, 1, 1)
    return jnp.where(y > 0, y, alpha * y)


def _check(N, Cin, H, W, Cout, k, stride, padding, key, tol=3e-2):
    kx, kw_, kg, kb = jax.random.split(key, 4)
    x = jax.random.normal(kx, (N, Cin, H, W), dtype=jnp.float32)
    weight = 0.1 * jax.random.normal(kw_, (Cout, Cin, k, k), dtype=jnp.float32)  # bias=False
    gamma = 1.0 + 0.1 * jax.random.normal(kg, (Cout,), dtype=jnp.float32)        # BN weight
    beta = 0.1 * jax.random.normal(kb, (Cout,), dtype=jnp.float32)               # BN bias
    alpha = 0.25                                                                 # PReLU init

    out = basic_conv_prelu(x, weight, gamma, beta, alpha,
                           stride=stride, padding=padding)
    jax.block_until_ready(out)
    Hout = (H + 2 * padding - k) // stride + 1
    Wout = (W + 2 * padding - k) // stride + 1
    assert out.shape == (N, Cout, Hout, Wout), out.shape

    ref = _reference(x, weight, gamma, beta, alpha, stride, padding)
    jax.block_until_ready(ref)
    # Loose tolerance: bf16 MXU feeds vs XLA's f32 conv path.
    err = float(jnp.max(jnp.abs(out - ref)))
    assert bool(jnp.allclose(out, ref, atol=tol, rtol=tol)), err


if __name__ == "__main__":
    key = jax.random.PRNGKey(0)
    k1, k2 = jax.random.split(key)
    # BasicConv_PRelu(in_planes=4, out_planes=8, kernel_size=3, stride=1,
    #                 padding=1, relu=True, bn=True, bias=False)
    _check(N=2, Cin=4, H=16, W=16, Cout=8, k=3, stride=1, padding=1, key=k1)
    # Wider contraction (K_pad = 384 > 2*C_pad): exercises the y-intermediate plan.
    _check(N=2, Cin=32, H=8, W=8, Cout=8, k=3, stride=1, padding=1, key=k2)
    print("KERNEL_OK")
</pallas_src>

<mosaic_0001>
module attributes {stable_mosaic.version = 11 : i64} {
  func.func @_conv_stats_kernel(%arg0: i32, %arg1: memref<512x128xbf16, #tpu.memory_space<vmem>>, %arg2: memref<128x128xbf16, #tpu.memory_space<vmem>>, %arg3: memref<1x128xf32, #tpu.memory_space<vmem>>, %arg4: memref<1x128xf32, #tpu.memory_space<vmem>>, %arg5: memref<1x128xf32, #tpu.memory_space<vmem>>, %arg6: memref<1x128xf32, #tpu.memory_space<vmem>>, %arg7: memref<1x128xf32, #tpu.memory_space<vmem>>, %arg8: memref<1x128xf32, #tpu.memory_space<vmem>>) attributes {dimension_semantics = [#tpu.dimension_semantics<arbitrary>], iteration_bounds = array<i64: 1>, scalar_prefetch = 0 : i64, scratch_operands = 2 : i64, tpu.core_type = #tpu.core_type<tc>, window_params = [{transform_indices = @transform_0, window_bounds = array<i64: 512, 128>}, {pipeline_mode = #tpu.pipeline_mode<synchronous>, transform_indices = @transform_1, window_bounds = array<i64: 128, 128>}, {pipeline_mode = #tpu.pipeline_mode<synchronous>, transform_indices = @transform_2, window_bounds = array<i64: 1, 128>}, {pipeline_mode = #tpu.pipeline_mode<synchronous>, transform_indices = @transform_3, window_bounds = array<i64: 1, 128>}, {pipeline_mode = #tpu.pipeline_mode<synchronous>, transform_indices = @transform_4, window_bounds = array<i64: 1, 128>}, {pipeline_mode = #tpu.pipeline_mode<synchronous>, transform_indices = @transform_5, window_bounds = array<i64: 1, 128>}]} {
    %c0 = arith.constant 0 : index
    %c0_0 = arith.constant 0 : index
    %0 = vector.load %arg1[%c0, %c0_0] : memref<512x128xbf16, #tpu.memory_space<vmem>>, vector<512x128xbf16>
    %c0_1 = arith.constant 0 : index
    %c0_2 = arith.constant 0 : index
    %1 = vector.load %arg2[%c0_1, %c0_2] : memref<128x128xbf16, #tpu.memory_space<vmem>>, vector<128x128xbf16>
    %cst = arith.constant dense<0.000000e+00> : vector<512x128xf32>
    %2 = tpu.matmul %0, %1, %cst {dimension_numbers = #tpu.dot_dimension_numbers<[1], [0], [0], [1], [0, 0, 1, 1], [], []>} : vector<512x128xbf16>, vector<128x128xbf16>, vector<512x128xf32> -> vector<512x128xf32>
    %c0_i32 = arith.constant 0 : i32
    %3 = arith.cmpi eq, %arg0, %c0_i32 : i32
    %4 = arith.extui %3 : i1 to i32
    %c0_i32_3 = arith.constant 0 : i32
    %5 = arith.cmpi ne, %4, %c0_i32_3 : i32
    scf.if %5 {
      %cst_16 = arith.constant 0.000000e+00 : f32
      %20 = vector.broadcast %cst_16 : f32 to vector<1x128xf32>
      %c0_17 = arith.constant 0 : index
      %c0_18 = arith.constant 0 : index
      %21 = vector.load %arg7[%c0_17, %c0_18] : memref<1x128xf32, #tpu.memory_space<vmem>>, vector<1x128xf32>
      tpu.vector_store %arg7[%c0_17, %c0_18], %20 {strides = array<i32>} : memref<1x128xf32, #tpu.memory_space<vmem>>, vector<1x128xf32>,
      %cst_19 = arith.constant 0.000000e+00 : f32
      %22 = vector.broadcast %cst_19 : f32 to vector<1x128xf32>
      %c0_20 = arith.constant 0 : index
      %c0_21 = arith.constant 0 : index
      %23 = vector.load %arg8[%c0_20, %c0_21] : memref<1x128xf32, #tpu.memory_space<vmem>>, vector<1x128xf32>
      tpu.vector_store %arg8[%c0_20, %c0_21], %22 {strides = array<i32>} : memref<1x128xf32, #tpu.memory_space<vmem>>, vector<1x128xf32>,
    } else {
    }
    %c0_4 = arith.constant 0 : index
    %c0_5 = arith.constant 0 : index
    %6 = vector.load %arg7[%c0_4, %c0_5] : memref<1x128xf32, #tpu.memory_space<vmem>>, vector<1x128xf32>
    %cst_6 = arith.constant dense<0.000000e+00> : vector<128xf32>
    %7 = vector.multi_reduction <add>, %2, %cst_6 [0] : vector<512x128xf32> to vector<128xf32>
    %8 = vector.shape_cast %7 : vector<128xf32> to vector<1x128xf32>
    %9 = arith.addf %6, %8 : vector<1x128xf32>
    %c0_7 = arith.constant 0 : index
    %c0_8 = arith.constant 0 : index
    %10 = vector.load %arg7[%c0_7, %c0_8] : memref<1x128xf32, #tpu.memory_space<vmem>>, vector<1x128xf32>
    tpu.vector_store %arg7[%c0_7, %c0_8], %9 {strides = array<i32>} : memref<1x128xf32, #tpu.memory_space<vmem>>, vector<1x128xf32>,
    %c0_9 = arith.constant 0 : index
    %c0_10 = arith.constant 0 : index
    %11 = vector.load %arg8[%c0_9, %c0_10] : memref<1x128xf32, #tpu.memory_space<vmem>>, vector<1x128xf32>
    %12 = arith.mulf %2, %2 : vector<512x128xf32>
    %cst_11 = arith.constant dense<0.000000e+00> : vector<128xf32>
    %13 = vector.multi_reduction <add>, %12, %cst_11 [0] : vector<512x128xf32> to vector<128xf32>
    %14 = vector.shape_cast %13 : vector<128xf32> to vector<1x128xf32>
    %15 = arith.addf %11, %14 : vector<1x128xf32>
    %c0_12 = arith.constant 0 : index
    %c0_13 = arith.constant 0 : index
    %16 = vector.load %arg8[%c0_12, %c0_13] : memref<1x128xf32, #tpu.memory_space<vmem>>, vector<1x128xf32>
    tpu.vector_store %arg8[%c0_12, %c0_13], %15 {strides = array<i32>} : memref<1x128xf32, #tpu.memory_space<vmem>>, vector<1x128xf32>,
    %c0_i32_14 = arith.constant 0 : i32
    %17 = arith.cmpi eq, %arg0, %c0_i32_14 : i32
    %18 = arith.extui %17 : i1 to i32
    %c0_i32_15 = arith.constant 0 : i32
    %19 = arith.cmpi ne, %18, %c0_i32_15 : i32
    scf.if %19 {
      %c0_16 = arith.constant 0 : index
      %c0_17 = arith.constant 0 : index
      %20 = vector.load %arg7[%c0_16, %c0_17] : memref<1x128xf32, #tpu.memory_space<vmem>>, vector<1x128xf32>
      %cst_18 = arith.constant 0.001953125 : f32
      %21 = vector.broadcast %cst_18 : f32 to vector<1x128xf32>
      %22 = arith.mulf %20, %21 : vector<1x128xf32>
      %c0_19 = arith.constant 0 : index
      %c0_20 = arith.constant 0 : index
      %23 = vector.load %arg8[%c0_19, %c0_20] : memref<1x128xf32, #tpu.memory_space<vmem>>, vector<1x128xf32>
      %cst_21 = arith.constant 0.001953125 : f32
      %24 = vector.broadcast %cst_21 : f32 to vector<1x128xf32>
      %25 = arith.mulf %23, %24 : vector<1x128xf32>
      %26 = arith.mulf %22, %22 : vector<1x128xf32>
      %27 = arith.subf %25, %26 : vector<1x128xf32>
      %c0_22 = arith.constant 0 : index
      %c0_23 = arith.constant 0 : index
      %28 = vector.load %arg3[%c0_22, %c0_23] : memref<1x128xf32, #tpu.memory_space<vmem>>, vector<1x128xf32>
      %cst_24 = arith.constant 9.99999974E-6 : f32
      %29 = vector.broadcast %cst_24 : f32 to vector<1x128xf32>
      %30 = arith.addf %27, %29 : vector<1x128xf32>
      %31 = math.rsqrt %30 : vector<1x128xf32>
      %32 = arith.mulf %28, %31 : vector<1x128xf32>
      %c0_25 = arith.constant 0 : index
      %c0_26 = arith.constant 0 : index
      %33 = vector.load %arg5[%c0_25, %c0_26] : memref<1x128xf32, #tpu.memory_space<vmem>>, vector<1x128xf32>
      tpu.vector_store %arg5[%c0_25, %c0_26], %32 {strides = array<i32>} : memref<1x128xf32, #tpu.memory_space<vmem>>, vector<1x128xf32>,
      %c0_27 = arith.constant 0 : index
      %c0_28 = arith.constant 0 : index
      %34 = vector.load %arg4[%c0_27, %c0_28] : memref<1x128xf32, #tpu.memory_space<vmem>>, vector<1x128xf32>
      %35 = arith.mulf %22, %32 : vector<1x128xf32>
      %36 = arith.subf %34, %35 : vector<1x128xf32>
      %c0_29 = arith.constant 0 : index
      %c0_30 = arith.constant 0 : index
      %37 = vector.load %arg6[%c0_29, %c0_30] : memref<1x128xf32, #tpu.memory_space<vmem>>, vector<1x128xf32>
      tpu.vector_store %arg6[%c0_29, %c0_30], %36 {strides = array<i32>} : memref<1x128xf32, #tpu.memory_space<vmem>>, vector<1x128xf32>,
    } else {
    }
    return
  }
  func.func @transform_0(%arg0: i32) -> (i32, i32) {
    %c0_i32 = arith.constant 0 : i32
    %c0_i32_0 = arith.constant 0 : i32
    return %arg0, %c0_i32 : i32, i32
  }
  func.func @transform_1(%arg0: i32) -> (i32, i32) {
    %c0_i32 = arith.constant 0 : i32
    %c0_i32_0 = arith.constant 0 : i32
    %c0_i32_1 = arith.constant 0 : i32
    return %c0_i32, %c0_i32_0 : i32, i32
  }
  func.func @transform_2(%arg0: i32) -> (i32, i32) {
    %c0_i32 = arith.constant 0 : i32
    %c0_i32_0 = arith.constant 0 : i32
    %c0_i32_1 = arith.constant 0 : i32
    return %c0_i32, %c0_i32_0 : i32, i32
  }
  func.func @transform_3(%arg0: i32) -> (i32, i32) {
    %c0_i32 = arith.constant 0 : i32
    %c0_i32_0 = arith.constant 0 : i32
    %c0_i32_1 = arith.constant 0 : i32
    return %c0_i32, %c0_i32_0 : i32, i32
  }
  func.func @transform_4(%arg0: i32) -> (i32, i32) {
    %c0_i32 = arith.constant 0 : i32
    %c0_i32_0 = arith.constant 0 : i32
    %c0_i32_1 = arith.constant 0 : i32
    return %c0_i32, %c0_i32_0 : i32, i32
  }
  func.func @transform_5(%arg0: i32) -> (i32, i32) {
    %c0_i32 = arith.constant 0 : i32
    %c0_i32_0 = arith.constant 0 : i32
    %c0_i32_1 = arith.constant 0 : i32
    return %c0_i32, %c0_i32_0 : i32, i32
  }
}

</mosaic_0001>

<bundles_post_ra>
// kernel: tpu_custom_call.1
= control target key start
LH: loop header
LB: loop body
LE: loop exit
PB: predicated region body
PF: predicated region fallthrough
CT: control target
= control target key end

     0   :  { %11 = vsyncpa [#allocation5], 0  ;;  %s1379_s0 = inlined_call_operand.hbm [shape: bf16[512,128], index: 0, kind: input, shape index: {}]   ;;  %s1380_s1 = inlined_call_operand.hbm [shape: bf16[128,128], index: 1, kind: input, shape index: {}]   ;;  %s1381_s2 = inlined_call_operand.vmem [shape: f32[1,128], index: 2, kind: input, shape index: {}]   ;;  %s1382_s3 = inlined_call_operand.vmem [shape: f32[1,128], index: 3, kind: input, shape index: {}]   ;;  %s1383_s4 = inlined_call_operand.hbm [shape: f32[1,128], index: 4, kind: output, shape index: {0}]   ;;  %s1384_s5 = inlined_call_operand.hbm [shape: f32[1,128], index: 5, kind: output, shape index: {1}]  }
   0x1   :  { %12 = vsyncpa [#allocation8], 0 }
   0x2   :  { %13 = vsyncpa [#allocation6], 0 }
   0x3   :  { %14 = vsyncpa [#allocation11], 0  ;;  %s19_s20 = sshll.u32 %s1379_s0, 4  ;;  %s1154_s21 = smov [#allocation4]   ;;  %s20_s20 = int_to_ptr.hbm [resolvable:$true] %s19_s20 }
   0x4   :  { %s21_s22 = sshll.u32 %s1154_s21, 4  ;;  %s32_s25 = sshll.u32 %s1380_s1, 4  ;;  %s22_s22 = int_to_ptr.vmem [resolvable:$true] %s21_s22  ;;  %s33_s25 = int_to_ptr.hbm [resolvable:$true] %s32_s25 }
   0x5   :  { %s1155_s26 = smov 64   ;;  %s1156_s27 = smov 4  }
   0x6   :  { %27 = dma.hbm_to_vmem [thread:$0]  %s20_s20, 4096, %s22_s22, [#allocation5], %s1155_s26, %s1155_s26, %s1156_s27  }
   0x7   :  { %s1157_s28 = smov [#allocation7]  }
   0x8   :  { %s34_s29 = sshll.u32 %s1157_s28, 4  ;;  %s35_s29 = int_to_ptr.vmem [resolvable:$true] %s34_s29 }
   0x9   :  { %40 = dma.hbm_to_vmem [thread:$0]  %s33_s25, 1024, %s35_s29, [#allocation8], %s1155_s26, %s1155_s26, %s1156_s27  }
   0xa   :  { %1146 = dma.done.wait [#allocation5], 4096  }
   0xb   :  { %1147 = vsyncadd [#allocation5], 4294963200 }
   0xc   :  { %1148 = dma.done.wait [#allocation8], 1024  }
   0xd   :  { %1149 = vsyncadd [#allocation8], 4294966272  ;;  %v1016_v0 = vld [vmem:[#allocation7 + $0x38] sm:$0xff]  ;;  %v1015_v1 = vld [vmem:[#allocation7 + $0x30] sm:$0xff]  ;;  %s1159_s30 = smov [#allocation9]   ;;  %s790_s9 = sshll.u32 %s1383_s4, 4  ;;  %s791_s9 = int_to_ptr.hbm [resolvable:$true] %s790_s9 }
   0xe   :  { %373 = vmatpush.bf16.msra.mxu0 %v1016_v0  ;;  %1017 = vmatpush.bf16.msra.mxu1 %v1016_v0  ;;  %v1014_v2 = vld [vmem:[#allocation7 + $0x28] sm:$0xff]  ;;  %v1013_v3 = vld [vmem:[#allocation7 + $0x20] sm:$0xff]  ;;  %v1012_v4 = vld [vmem:[#allocation7 + $0x18] sm:$0xff]  ;;  %s788_s6 = sshll.u32 %s1159_s30, 4  ;;  %s1160_s12 = smov [#allocation10]   ;;  %s789_s6 = int_to_ptr.vmem [resolvable:$true] %s788_s6 }
   0xf   :  { %1018 = vmatpush.bf16.msra.mxu2 %v1016_v0  ;;  %1019 = vmatpush.bf16.msra.mxu3 %v1016_v0  ;;  %v1011_v5 = vld [vmem:[#allocation7 + $0x10] sm:$0xff]  ;;  %v1010_v6 = vld [vmem:[#allocation7 + $0x8] sm:$0xff]  ;;  %v1009_v7 = vld [vmem:[#allocation7] sm:$0xff]  ;;  %s799_s13 = sshll.u32 %s1160_s12, 4  ;;  %s801_s15 = sshll.u32 %s1384_s5, 4  ;;  %s800_s13 = int_to_ptr.vmem [resolvable:$true] %s799_s13  ;;  %s802_s15 = int_to_ptr.hbm [resolvable:$true] %s801_s15 }
  0x10   :  { %v977_v8 = vld [vmem:[#allocation4] sm:$0xff]  ;;  %v978_v10 = vld [vmem:[#allocation4 + $0x8] sm:$0xff]  ;;  %v979_v13 = vld [vmem:[#allocation4 + $0x10] sm:$0xff] }
  0x11   :  { %v985_v9 = vld [vmem:[#allocation4 + $0x40] sm:$0xff]  ;;  %v986_v11 = vld [vmem:[#allocation4 + $0x48] sm:$0xff]  ;;  %v987_v14 = vld [vmem:[#allocation4 + $0x50] sm:$0xff] }
  0x12   :  { %374 = vmatpush.bf16.msra.mxu0 %v1015_v1  ;;  %1020 = vmatpush.bf16.msra.mxu1 %v1015_v1  ;;  %v993_v12 = vld [vmem:[#allocation4 + $0x80] sm:$0xff]  ;;  %v994_v15 = vld [vmem:[#allocation4 + $0x88] sm:$0xff]  ;;  %v980_v16 = vld [vmem:[#allocation4 + $0x18] sm:$0xff] }
  0x13   :  { %1021 = vmatpush.bf16.msra.mxu2 %v1015_v1  ;;  %1022 = vmatpush.bf16.msra.mxu3 %v1015_v1  ;;  %v988_v17 = vld [vmem:[#allocation4 + $0x58] sm:$0xff]  ;;  %v995_v18 = vld [vmem:[#allocation4 + $0x90] sm:$0xff]  ;;  %v1001_v19 = vld [vmem:[#allocation4 + $0xc0] sm:$0xff] }
  0x14   :  { %v981_v20 = vld [vmem:[#allocation4 + $0x20] sm:$0xff]  ;;  %v996_v22 = vld [vmem:[#allocation4 + $0x98] sm:$0xff]  ;;  %v1002_v23 = vld [vmem:[#allocation4 + $0xc8] sm:$0xff] }
  0x15   :  { %v989_v21 = vld [vmem:[#allocation4 + $0x60] sm:$0xff]  ;;  %v982_v24 = vld [vmem:[#allocation4 + $0x28] sm:$0xff]  ;;  %v1003_v27 = vld [vmem:[#allocation4 + $0xd0] sm:$0xff] }
  0x16   :  { %375 = vmatpush.bf16.msra.mxu0 %v1014_v2  ;;  %1023 = vmatpush.bf16.msra.mxu1 %v1014_v2  ;;  %v990_v25 = vld [vmem:[#allocation4 + $0x68] sm:$0xff]  ;;  %v997_v26 = vld [vmem:[#allocation4 + $0xa0] sm:$0xff]  ;;  %v983_v28 = vld [vmem:[#allocation4 + $0x30] sm:$0xff] }
  0x17   :  { %1024 = vmatpush.bf16.msra.mxu2 %v1014_v2  ;;  %1025 = vmatpush.bf16.msra.mxu3 %v1014_v2  ;;  %v991_v29 = vld [vmem:[#allocation4 + $0x70] sm:$0xff]  ;;  %v998_v30 = vld [vmem:[#allocation4 + $0xa8] sm:$0xff]  ;;  %v1004_v31 = vld [vmem:[#allocation4 + $0xd8] sm:$0xff] }
  0x18   :  { %v984_v32 = vld [vmem:[#allocation4 + $0x38] sm:$0xff]  ;;  %v999_v34 = vld [vmem:[#allocation4 + $0xb0] sm:$0xff]  ;;  %v1005_v35 = vld [vmem:[#allocation4 + $0xe0] sm:$0xff] }
  0x19   :  { %v992_v33 = vld [vmem:[#allocation4 + $0x78] sm:$0xff]  ;;  %v1006_v39 = vld [vmem:[#allocation4 + $0xe8] sm:$0xff]  ;;  %v1007_v50 = vld [vmem:[#allocation4 + $0xf0] sm:$0xff] }
  0x1a   :  { %376 = vmatpush.bf16.msra.mxu0 %v1013_v3  ;;  %1026 = vmatpush.bf16.msra.mxu1 %v1013_v3  ;;  %v1000_v38 = vld [vmem:[#allocation4 + $0xb8] sm:$0xff] }
  0x1b   :  { %1027 = vmatpush.bf16.msra.mxu2 %v1013_v3  ;;  %1028 = vmatpush.bf16.msra.mxu3 %v1013_v3  ;;  %v1008_v62 = vld [vmem:[#allocation4 + $0xf8] sm:$0xff] }
  0x1e   :  { %377 = vmatpush.bf16.msra.mxu0 %v1012_v4  ;;  %1029 = vmatpush.bf16.msra.mxu1 %v1012_v4 }
  0x1f   :  { %1030 = vmatpush.bf16.msra.mxu2 %v1012_v4  ;;  %1031 = vmatpush.bf16.msra.mxu3 %v1012_v4 }
  0x22   :  { %378 = vmatpush.bf16.msra.mxu0 %v1011_v5  ;;  %1032 = vmatpush.bf16.msra.mxu1 %v1011_v5 }
  0x23   :  { %1033 = vmatpush.bf16.msra.mxu2 %v1011_v5  ;;  %1034 = vmatpush.bf16.msra.mxu3 %v1011_v5 }
  0x26   :  { %379 = vmatpush.bf16.msra.mxu0 %v1010_v6  ;;  %1035 = vmatpush.bf16.msra.mxu1 %v1010_v6 }
  0x27   :  { %1036 = vmatpush.bf16.msra.mxu2 %v1010_v6  ;;  %1037 = vmatpush.bf16.msra.mxu3 %v1010_v6 }
  0x2a   :  { %380 = vmatpush.bf16.msra.mxu0 %v1009_v7  ;;  %1038 = vmatpush.bf16.msra.mxu1 %v1009_v7 }
  0x2b   :  { %1039 = vmatpush.bf16.msra.mxu2 %v1009_v7  ;;  %1040 = vmatpush.bf16.msra.mxu3 %v1009_v7 }
  0x2d   :  { %381 = vmatmul.bf16.vlgmr.msra.gmra.mxu0 %v977_v8  ;;  %421 = vmatmul.bf16.vlgmr.msra.gmra.mxu1 %v985_v9 }
  0x2e   :  { %461 = vmatmul.bf16.vlgmr.msra.gmra.mxu2 %v993_v12  ;;  %501 = vmatmul.bf16.vlgmr.msra.gmra.mxu3 %v1001_v19 }
  0x3d   :  { %386 = vmatmul.bf16.gmra.mxu0 %v978_v10  ;;  %426 = vmatmul.bf16.gmra.mxu1 %v986_v11 }
  0x3e   :  { %466 = vmatmul.bf16.gmra.mxu2 %v994_v15  ;;  %506 = vmatmul.bf16.gmra.mxu3 %v1002_v23 }
  0x4d   :  { %391 = vmatmul.bf16.gmra.mxu0 %v979_v13  ;;  %431 = vmatmul.bf16.gmra.mxu1 %v987_v14 }
  0x4e   :  { %471 = vmatmul.bf16.gmra.mxu2 %v995_v18  ;;  %511 = vmatmul.bf16.gmra.mxu3 %v1003_v27 }
  0x5d   :  { %396 = vmatmul.bf16.gmra.mxu0 %v980_v16  ;;  %436 = vmatmul.bf16.gmra.mxu1 %v988_v17 }
  0x5e   :  { %476 = vmatmul.bf16.gmra.mxu2 %v996_v22  ;;  %516 = vmatmul.bf16.gmra.mxu3 %v1004_v31 }
  0x6d   :  { %401 = vmatmul.bf16.gmra.mxu0 %v981_v20  ;;  %441 = vmatmul.bf16.gmra.mxu1 %v989_v21 }
  0x6e   :  { %481 = vmatmul.bf16.gmra.mxu2 %v997_v26  ;;  %521 = vmatmul.bf16.gmra.mxu3 %v1005_v35 }
  0x7d   :  { %406 = vmatmul.bf16.gmra.mxu0 %v982_v24  ;;  %446 = vmatmul.bf16.gmra.mxu1 %v990_v25 }
  0x7e   :  { %486 = vmatmul.bf16.gmra.mxu2 %v998_v30  ;;  %526 = vmatmul.bf16.gmra.mxu3 %v1006_v39 }
  0x8d   :  { %411 = vmatmul.bf16.gmra.mxu0 %v983_v28  ;;  %451 = vmatmul.bf16.gmra.mxu1 %v991_v29 }
  0x8e   :  { %491 = vmatmul.bf16.gmra.mxu2 %v999_v34  ;;  %531 = vmatmul.bf16.gmra.mxu3 %v1007_v50 }
  0x9d   :  { %416 = vmatmul.bf16.gmra.mxu0 %v984_v32  ;;  %456 = vmatmul.bf16.gmra.mxu1 %v992_v33 }
  0x9e   :  { %496 = vmatmul.bf16.gmra.mxu2 %v1000_v38  ;;  %536 = vmatmul.bf16.gmra.mxu3 %v1008_v62 }
  0xaa   :  { %v382_v36 = vpop.f32.mrf.mxu0  ;;  %v1197_v37 = vpop.f32.mrf.mxu1 }
  0xab   :  { %v621_v41 = vmul.f32 %v382_v36, %v382_v36 }
  0xb1   :  { %v1205_v58 = vpop.f32.mrf.mxu2  ;;  %v1219_v9 = vpop.f32.mrf.mxu3 }
  0xb2   :  { %v384_v40 = vpop.f32.mrf.mxu0  ;;  %v1199_v44 = vpop.f32.mrf.mxu1 }
  0xb3   :  { %v549_v42 = vadd.f32 %v384_v40, %v382_v36  ;;  %v622_v43 = vmul.f32 %v384_v40, %v384_v40 }
  0xb5   :  { %v685_v45 = vadd.f32 %v622_v43, %v621_v41 }
  0xb9   :  { %v1209_v1 = vpop.f32.mrf.mxu2  ;;  %v1225_v13 = vpop.f32.mrf.mxu3 }
  0xba   :  { %v387_v46 = vpop.f32.mrf.mxu0  ;;  %v1201_v51 = vpop.f32.mrf.mxu1 }
  0xbb   :  { %v550_v47 = vadd.f32 %v549_v42, %v387_v46  ;;  %v623_v48 = vmul.f32 %v387_v46, %v387_v46 }
  0xbd   :  { %v686_v49 = vadd.f32 %v685_v45, %v623_v48 }
  0xc1   :  { %v1213_v4 = vpop.f32.mrf.mxu2  ;;  %v1231_v17 = vpop.f32.mrf.mxu3 }
  0xc2   :  { %v389_v52 = vpop.f32.mrf.mxu0  ;;  %v1203_v56 = vpop.f32.mrf.mxu1 }
  0xc3   :  { %v551_v53 = vadd.f32 %v550_v47, %v389_v52  ;;  %v624_v54 = vmul.f32 %v389_v52, %v389_v52 }
  0xc5   :  { %v687_v55 = vadd.f32 %v686_v49, %v624_v54 }
  0xc9   :  { %v1217_v7 = vpop.f32.mrf.mxu2  ;;  %v1237_v21 = vpop.f32.mrf.mxu3 }
  0xca   :  { %v392_v57 = vpop.f32.mrf.mxu0  ;;  %v1207_v0 = vpop.f32.mrf.mxu1 }
  0xcb   :  { %v552_v59 = vadd.f32 %v551_v53, %v392_v57  ;;  %v625_v60 = vmul.f32 %v392_v57, %v392_v57 }
  0xcd   :  { %v688_v61 = vadd.f32 %v687_v55, %v625_v60 }
  0xd1   :  { %v1223_v12 = vpop.f32.mrf.mxu2  ;;  %v1243_v32 = vpop.f32.mrf.mxu3 }
  0xd2   :  { %v394_v63 = vpop.f32.mrf.mxu0  ;;  %v1211_v3 = vpop.f32.mrf.mxu1 }
  0xd3   :  { %v626_v23 = vmul.f32 %v394_v63, %v394_v63  ;;  %v553_v25 = vadd.f32 %v552_v59, %v394_v63 }
  0xd5   :  { %v689_v28 = vadd.f32 %v688_v61, %v626_v23 }
  0xd9   :  { %v1229_v16 = vpop.f32.mrf.mxu2  ;;  %v1249_v54 = vpop.f32.mrf.mxu3 }
  0xda   :  { %v397_v2 = vpop.f32.mrf.mxu0  ;;  %v1215_v6 = vpop.f32.mrf.mxu1 }
  0xdb   :  { %v627_v26 = vmul.f32 %v397_v2, %v397_v2  ;;  %v554_v29 = vadd.f32 %v553_v25, %v397_v2 }
  0xdd   :  { %v690_v33 = vadd.f32 %v689_v28, %v627_v26 }
  0xe1   :  { %v1235_v20 = vpop.f32.mrf.mxu2 }
  0xe2   :  { %v399_v5 = vpop.f32.mrf.mxu0  ;;  %v1221_v10 = vpop.f32.mrf.mxu1 }
  0xe3   :  { %v628_v30 = vmul.f32 %v399_v5, %v399_v5  ;;  %v555_v34 = vadd.f32 %v554_v29, %v399_v5  ;;  %v638_v29 = vmul.f32 %v1199_v44, %v1199_v44 }
  0xe5   :  { %v691_v36 = vadd.f32 %v690_v33, %v628_v30  ;;  %v639_v33 = vmul.f32 %v1201_v51, %v1201_v51 }
  0xe9   :  { %v1241_v27 = vpop.f32.mrf.mxu2 }
  0xea   :  { %v402_v8 = vpop.f32.mrf.mxu0  ;;  %v1227_v15 = vpop.f32.mrf.mxu1 }
  0xeb   :  { %v629_v35 = vmul.f32 %v402_v8, %v402_v8  ;;  %v556_v38 = vadd.f32 %v555_v34, %v402_v8 }
  0xed   :  { %v692_v40 = vadd.f32 %v691_v36, %v629_v35  ;;  %v640_v36 = vmul.f32 %v1203_v56, %v1203_v56 }
  0xf1   :  { %v1247_v49 = vpop.f32.mrf.mxu2 }
  0xf2   :  { %v404_v11 = vpop.f32.mrf.mxu0  ;;  %v1233_v19 = vpop.f32.mrf.mxu1 }
  0xf3   :  { %v630_v39 = vmul.f32 %v404_v11, %v404_v11  ;;  %v557_v41 = vadd.f32 %v556_v38, %v404_v11 }
  0xf5   :  { %v693_v45 = vadd.f32 %v692_v40, %v630_v39  ;;  %v641_v40 = vmul.f32 %v1207_v0, %v1207_v0 }
  0xf9   :  { %v1251_v25 = vpop.f32.mrf.mxu2 }
  0xfa   :  { %v407_v14 = vpop.f32.mrf.mxu0  ;;  %v1239_v24 = vpop.f32.mrf.mxu1 }
  0xfb   :  { %v631_v42 = vmul.f32 %v407_v14, %v407_v14  ;;  %v558_v46 = vadd.f32 %v557_v41, %v407_v14 }
  0xfd   :  { %v694_v50 = vadd.f32 %v693_v45, %v631_v42  ;;  %v642_v45 = vmul.f32 %v1211_v3, %v1211_v3 }
 0x101   :  { %v1270_v42 = vpop.f32.mrf.mxu2 }
 0x102   :  { %v409_v18 = vpop.f32.mrf.mxu0  ;;  %v1245_v43 = vpop.f32.mrf.mxu1 }
 0x103   :  { %v632_v47 = vmul.f32 %v409_v18, %v409_v18  ;;  %v559_v52 = vadd.f32 %v558_v46, %v409_v18  ;;  %v637_v18 = vmul.f32 %v1197_v37, %v1197_v37 }
 0x105   :  { %v695_v55 = vadd.f32 %v694_v50, %v632_v47 }
 0x10a   :  { %v412_v22 = vpop.f32.mrf.mxu0  ;;  %v452_v8 = vpop.f32.mrf.mxu1 }
 0x10b   :  { %v633_v53 = vmul.f32 %v412_v22, %v412_v22  ;;  %v560_v57 = vadd.f32 %v559_v52, %v412_v22  ;;  %v1256_v22 = vpop.f32.mrf.mxu3 }
 0x10d   :  { %v696_v60 = vadd.f32 %v695_v55, %v633_v53  ;;  %v645_v55 = vmul.f32 %v1227_v15, %v1227_v15 }
 0x112   :  { %v414_v31 = vpop.f32.mrf.mxu0  ;;  %v454_v39 = vpop.f32.mrf.mxu1 }
 0x113   :  { %v634_v59 = vmul.f32 %v414_v31, %v414_v31  ;;  %v561_v61 = vadd.f32 %v560_v57, %v414_v31  ;;  %v1275_v47 = vpop.f32.mrf.mxu3 }
 0x115   :  { %v697_v63 = vadd.f32 %v696_v60, %v634_v59  ;;  %v646_v60 = vmul.f32 %v1233_v19, %v1233_v19 }
 0x11a   :  { %v417_v48 = vpop.f32.mrf.mxu0  ;;  %v457_v59 = vpop.f32.mrf.mxu1 }
 0x11b   :  { %v635_v62 = vmul.f32 %v417_v48, %v417_v48  ;;  %v562_v2 = vadd.f32 %v561_v61, %v417_v48 }
 0x11d   :  { %v698_v11 = vadd.f32 %v697_v63, %v635_v62  ;;  %v647_v63 = vmul.f32 %v1239_v24, %v1239_v24 }
 0x122   :  { %v419_v5 = vpop.f32.mrf.mxu0 }
 0x123   :  { %v563_v14 = vadd.f32 %v562_v2, %v419_v5  ;;  %v636_v23 = vmul.f32 %v419_v5, %v419_v5  ;;  %v1292_v5 = vpop.f32.mrf.mxu3 }
 0x125   :  { %v564_v26 = vadd.f32 %v563_v14, %v1197_v37  ;;  %v699_v28 = vadd.f32 %v698_v11, %v636_v23 }
 0x127   :  { %v565_v30 = vadd.f32 %v564_v26, %v1199_v44  ;;  %v700_v31 = vadd.f32 %v699_v28, %v637_v18  ;;  %v649_v18 = vmul.f32 %v452_v8, %v452_v8 }
 0x129   :  { %v566_v34 = vadd.f32 %v565_v30, %v1201_v51  ;;  %v701_v35 = vadd.f32 %v700_v31, %v638_v29  ;;  %v650_v29 = vmul.f32 %v454_v39, %v454_v39  ;;  %v459_v30 = vpop.f32.mrf.mxu1 }
 0x12b   :  { %v567_v37 = vadd.f32 %v566_v34, %v1203_v56  ;;  %v702_v38 = vadd.f32 %v701_v35, %v639_v33  ;;  %v643_v56 = vmul.f32 %v1215_v6, %v1215_v6  ;;  %v651_v34 = vmul.f32 %v457_v59, %v457_v59 }
 0x12d   :  { %v568_v41 = vadd.f32 %v567_v37, %v1207_v0  ;;  %v703_v44 = vadd.f32 %v702_v38, %v640_v36  ;;  %v644_v0 = vmul.f32 %v1221_v10, %v1221_v10  ;;  %v652_v37 = vmul.f32 %v459_v30, %v459_v30  ;;  %v1297_v38 = vpop.f32.mrf.mxu3 }
 0x12f   :  { %v569_v51 = vadd.f32 %v568_v41, %v1211_v3  ;;  %v704_v46 = vadd.f32 %v703_v44, %v641_v40  ;;  %v654_v41 = vmul.f32 %v1209_v1, %v1209_v1 }
 0x131   :  { %v705_v48 = vadd.f32 %v704_v46, %v642_v45  ;;  %v570_v50 = vadd.f32 %v569_v51, %v1215_v6  ;;  %v489_v6 = vpop.f32.mrf.mxu2  ;;  %v655_v45 = vmul.f32 %v1213_v4, %v1213_v4 }
 0x133   :  { %v571_v52 = vadd.f32 %v570_v50, %v1221_v10  ;;  %v706_v53 = vadd.f32 %v705_v48, %v643_v56  ;;  %v656_v56 = vmul.f32 %v1217_v7, %v1217_v7 }
 0x135   :  { %v572_v3 = vadd.f32 %v571_v52, %v1227_v15  ;;  %v707_v57 = vadd.f32 %v706_v53, %v644_v0  ;;  %v648_v15 = vmul.f32 %v1245_v43, %v1245_v43  ;;  %v657_v0 = vmul.f32 %v1223_v12, %v1223_v12  ;;  %v1314_v53 = vpop.f32.mrf.mxu3 }
 0x137   :  { %v573_v61 = vadd.f32 %v572_v3, %v1233_v19  ;;  %v708_v62 = vadd.f32 %v707_v57, %v645_v55  ;;  %v658_v55 = vmul.f32 %v1229_v16, %v1229_v16  ;;  %v659_v57 = vmul.f32 %v1235_v20, %v1235_v20 }
 0x139   :  { %v574_v10 = vadd.f32 %v573_v61, %v1239_v24  ;;  %v709_v2 = vadd.f32 %v708_v62, %v646_v60  ;;  %v492_v24 = vpop.f32.mrf.mxu2  ;;  %v660_v60 = vmul.f32 %v1241_v27, %v1241_v27  ;;  %v661_v62 = vmul.f32 %v1247_v49, %v1247_v49 }
 0x13b   :  { %v575_v11 = vadd.f32 %v574_v10, %v1245_v43  ;;  %v710_v14 = vadd.f32 %v709_v2, %v647_v63  ;;  %v653_v43 = vmul.f32 %v1205_v58, %v1205_v58  ;;  %v662_v2 = vmul.f32 %v1251_v25, %v1251_v25 }
 0x13d   :  { %v576_v23 = vadd.f32 %v575_v11, %v452_v8  ;;  %v711_v26 = vadd.f32 %v710_v14, %v648_v15  ;;  %v663_v14 = vmul.f32 %v1270_v42, %v1270_v42 }
 0x13f   :  { %v712_v19 = vadd.f32 %v711_v26, %v649_v18  ;;  %v577_v28 = vadd.f32 %v576_v23, %v454_v39  ;;  %v664_v26 = vmul.f32 %v489_v6, %v489_v6 }
 0x141   :  { %v713_v31 = vadd.f32 %v712_v19, %v650_v29  ;;  %v578_v33 = vadd.f32 %v577_v28, %v457_v59  ;;  %v665_v29 = vmul.f32 %v492_v24, %v492_v24 }
 0x143   :  { %v714_v35 = vadd.f32 %v713_v31, %v651_v34  ;;  %v579_v36 = vadd.f32 %v578_v33, %v459_v30 }
 0x145   :  { %v580_v40 = vadd.f32 %v579_v36, %v1205_v58  ;;  %v715_v8 = vadd.f32 %v714_v35, %v652_v37  ;;  %v494_v58 = vpop.f32.mrf.mxu2 }
 0x146   :  { %v666_v33 = vmul.f32 %v494_v58, %v494_v58 }
 0x147   :  { %v581_v39 = vadd.f32 %v580_v40, %v1209_v1  ;;  %v716_v44 = vadd.f32 %v715_v8, %v653_v43 }
 0x149   :  { %v582_v51 = vadd.f32 %v581_v39, %v1213_v4  ;;  %v717_v46 = vadd.f32 %v716_v44, %v654_v41  ;;  %v1158_v41 = vmov 0.0  }
 0x14a   :  { %546 = vst [vmem:[#allocation2] sm:$0x1] %v1158_v41 }
 0x14b   :  { %v583_v48 = vadd.f32 %v582_v51, %v1217_v7  ;;  %v718_v50 = vadd.f32 %v717_v46, %v655_v45  ;;  %547 = vst [vmem:[#allocation3] sm:$0x1] %v1158_v41  ;;  %v671_v51 = vmul.f32 %v1231_v17, %v1231_v17 }
 0x14d   :  { %v584_v52 = vadd.f32 %v583_v48, %v1223_v12  ;;  %v719_v1 = vadd.f32 %v718_v50, %v656_v56  ;;  %v672_v48 = vmul.f32 %v1237_v21, %v1237_v21 }
 0x14f   :  { %v585_v4 = vadd.f32 %v584_v52, %v1229_v16  ;;  %v720_v3 = vadd.f32 %v719_v1, %v657_v0  ;;  %v497_v16 = vpop.f32.mrf.mxu2  ;;  %v673_v0 = vmul.f32 %v1243_v32, %v1243_v32  ;;  %v674_v1 = vmul.f32 %v1249_v54, %v1249_v54 }
 0x150   :  { %v667_v36 = vmul.f32 %v497_v16, %v497_v16 }
 0x151   :  { %v721_v7 = vadd.f32 %v720_v3, %v658_v55  ;;  %v586_v59 = vadd.f32 %v585_v4, %v1235_v20  ;;  %v529_v20 = vpop.f32.mrf.mxu3  ;;  %v675_v4 = vmul.f32 %v1256_v22, %v1256_v22 }
 0x153   :  { %v587_v12 = vadd.f32 %v586_v59, %v1241_v27  ;;  %v722_v61 = vadd.f32 %v721_v7, %v659_v57  ;;  %v676_v57 = vmul.f32 %v1275_v47, %v1275_v47 }
 0x155   :  { %v588_v63 = vadd.f32 %v587_v12, %v1247_v49  ;;  %v723_v10 = vadd.f32 %v722_v61, %v660_v60  ;;  %v678_v61 = vmul.f32 %v1297_v38, %v1297_v38 }
 0x157   :  { %v589_v15 = vadd.f32 %v588_v63, %v1251_v25  ;;  %v724_v11 = vadd.f32 %v723_v10, %v661_v62  ;;  %v499_v34 = vpop.f32.mrf.mxu2 }
 0x158   :  { %v668_v8 = vmul.f32 %v499_v34, %v499_v34 }
 0x159   :  { %v590_v27 = vadd.f32 %v589_v15, %v1270_v42  ;;  %v725_v23 = vadd.f32 %v724_v11, %v662_v2  ;;  %v532_v37 = vpop.f32.mrf.mxu3  ;;  %v669_v42 = vmul.f32 %v1219_v9, %v1219_v9  ;;  %v680_v2 = vmul.f32 %v529_v20, %v529_v20 }
 0x15b   :  { %v591_v18 = vadd.f32 %v590_v27, %v489_v6  ;;  %v726_v19 = vadd.f32 %v725_v23, %v663_v14 }
 0x15d   :  { %v727_v28 = vadd.f32 %v726_v19, %v664_v26  ;;  %v592_v49 = vadd.f32 %v591_v18, %v492_v24  ;;  %v670_v24 = vmul.f32 %v1225_v13, %v1225_v13 }
 0x15f   :  { %v728_v30 = vadd.f32 %v727_v28, %v665_v29  ;;  %v593_v31 = vadd.f32 %v592_v49, %v494_v58 }
 0x161   :  { %v729_v35 = vadd.f32 %v728_v30, %v666_v33  ;;  %v594_v25 = vadd.f32 %v593_v31, %v497_v16  ;;  %v534_v58 = vpop.f32.mrf.mxu3 }
 0x162   :  { %v682_v18 = vmul.f32 %v534_v58, %v534_v58 }
 0x163   :  { %v730_v43 = vadd.f32 %v729_v35, %v667_v36  ;;  %v595_v40 = vadd.f32 %v594_v25, %v499_v34 }
 0x165   :  { %v596_v6 = vadd.f32 %v595_v40, %v1219_v9  ;;  %v731_v39 = vadd.f32 %v730_v43, %v668_v8  ;;  %v548_v40 = vld [vmem:[#allocation2] sm:$0x1] }
 0x167   :  { %v597_v44 = vadd.f32 %v596_v6, %v1225_v13  ;;  %v732_v45 = vadd.f32 %v731_v39, %v669_v42  ;;  %v620_v42 = vld [vmem:[#allocation3] sm:$0x1] }
 0x169   :  { %v598_v46 = vadd.f32 %v597_v44, %v1231_v17  ;;  %v733_v56 = vadd.f32 %v732_v45, %v670_v24 }
 0x16b   :  { %v599_v50 = vadd.f32 %v598_v46, %v1237_v21  ;;  %v734_v9 = vadd.f32 %v733_v56, %v671_v51 }
 0x16d   :  { %v600_v52 = vadd.f32 %v599_v50, %v1243_v32  ;;  %v735_v13 = vadd.f32 %v734_v9, %v672_v48  ;;  %v677_v32 = vmul.f32 %v1292_v5, %v1292_v5 }
 0x16f   :  { %v601_v55 = vadd.f32 %v600_v52, %v1249_v54  ;;  %v736_v17 = vadd.f32 %v735_v13, %v673_v0  ;;  %v537_v54 = vpop.f32.mrf.mxu3 }
 0x171   :  { %v737_v3 = vadd.f32 %v736_v17, %v674_v1  ;;  %v602_v21 = vadd.f32 %v601_v55, %v1256_v22  ;;  %v679_v22 = vmul.f32 %v1314_v53, %v1314_v53  ;;  %v765_v1 = vld [vmem:[%s1381_s2] sm:$0x1] }
 0x173   :  { %v603_v7 = vadd.f32 %v602_v21, %v1275_v47  ;;  %v738_v59 = vadd.f32 %v737_v3, %v675_v4  ;;  %v779_v3 = vld [vmem:[%s1382_s3] sm:$0x1] }
 0x175   :  { %v604_v60 = vadd.f32 %v603_v7, %v1292_v5  ;;  %v739_v12 = vadd.f32 %v738_v59, %v676_v57  ;;  %v681_v5 = vmul.f32 %v532_v37, %v532_v37 }
 0x177   :  { %v605_v62 = vadd.f32 %v604_v60, %v1297_v38  ;;  %v740_v63 = vadd.f32 %v739_v12, %v677_v32  ;;  %v539_v26 = vpop.f32.mrf.mxu3  ;;  %v683_v38 = vmul.f32 %v537_v54, %v537_v54 }
 0x178   :  { %v684_v30 = vmul.f32 %v539_v26, %v539_v26 }
 0x179   :  { %v606_v10 = vadd.f32 %v605_v62, %v1314_v53  ;;  %v741_v47 = vadd.f32 %v740_v63, %v678_v61 }
 0x17b   :  { %v607_v16 = vadd.f32 %v606_v10, %v529_v20  ;;  %v742_v15 = vadd.f32 %v741_v47, %v679_v22 }
 0x17d   :  { %v743_v11 = vadd.f32 %v742_v15, %v680_v2  ;;  %v608_v14 = vadd.f32 %v607_v16, %v532_v37 }
 0x17f   :  { %v744_v27 = vadd.f32 %v743_v11, %v681_v5  ;;  %v609_v23 = vadd.f32 %v608_v14, %v534_v58 }
 0x181   :  { %v745_v19 = vadd.f32 %v744_v27, %v682_v18  ;;  %v610_v28 = vadd.f32 %v609_v23, %v537_v54 }
 0x183   :  { %v746_v49 = vadd.f32 %v745_v19, %v683_v38  ;;  %v611_v29 = vadd.f32 %v610_v28, %v539_v26 }
 0x185   :  { %v612_v31 = vrot.slane %v611_v29, 4  ;;  %v747_v33 = vadd.f32 %v746_v49, %v684_v30 }
 0x187   :  { %v613_v53 = vadd.f32 %v612_v31, %v611_v29  ;;  %v748_v34 = vrot.slane %v747_v33, 4 }
 0x189   :  { %v614_v35 = vrot.slane %v613_v53, 2  ;;  %v749_v20 = vadd.f32 %v748_v34, %v747_v33 }
 0x18b   :  { %v615_v25 = vadd.f32 %v614_v35, %v613_v53  ;;  %v750_v36 = vrot.slane %v749_v20, 2 }
 0x18d   :  { %v616_v43 = vrot.slane %v615_v25, 1  ;;  %v751_v37 = vadd.f32 %v750_v36, %v749_v20 }
 0x18f   :  { %v617_v8 = vadd.f32 %v616_v43, %v615_v25  ;;  %v752_v41 = vrot.slane %v751_v37, 1 }
 0x191   :  { %v618_v6 = vadd.f32 %v617_v8, %v548_v40  ;;  %v753_v39 = vadd.f32 %v752_v41, %v751_v37 }
 0x193   :  { %619 = vst [vmem:[#allocation2] sm:$0x1] %v618_v6  ;;  %v754_v24 = vadd.f32 %v753_v39, %v620_v42 }
 0x195   :  { %755 = vst [vmem:[#allocation3] sm:$0x1] %v754_v24 }
 0x19a   :  { %v759_v44 = vld [vmem:[#allocation2] sm:$0x1] }
 0x19b   :  { %v760_v45 = vmul.f32 0.001953125, %v759_v44 }
 0x19c   :  { %v761_v51 = vld [vmem:[#allocation3] sm:$0x1] }
 0x19d   :  { %v762_v46 = vmul.f32 0.001953125, %v761_v51  ;;  %v763_v56 = vmul.f32 %v760_v45, %v760_v45 }
 0x19f   :  { %v764_v48 = vsub.f32 %v762_v46, %v763_v56 }
 0x1a1   :  { %v766_v50 = vadd.f32 1e-05, %v764_v48 }
 0x1a3   :  { %1048 = vrsqrt.f32 %v766_v50  ;;  %vm773_vm1 = vweird.f32 %v766_v50 }
 0x1a9   :  { %v1049_v9 = vpop.eup %1048 }
 0x1aa   :  { %v768_v58 = vmul.f32 %v1049_v9, %v766_v50  ;;  %vm774_vm0 = vweird.f32 %v1049_v9 }
 0x1ab   :  { %vm775_vm2 = vmor %vm773_vm1, %vm774_vm0 }
 0x1ac   :  { %v769_v0 = vmul.f32 %v1049_v9, %v768_v58 }
 0x1ae   :  { %v770_v52 = vmul.f32 0.5, %v769_v0 }
 0x1b0   :  { %v771_v13 = vsub.f32 1.5, %v770_v52 }
 0x1b2   :  { %v772_v55 = vmul.f32 %v1049_v9, %v771_v13 }
 0x1b4   :  { %v776_v17 = vsel %vm775_vm2, %v1049_v9, %v772_v55 }
 0x1b5   :  { %v777_v4 = vmul.f32 %v776_v17, %v765_v1 }
 0x1b7   :  { %778 = vst [vmem:[#allocation9] sm:$0x1] %v777_v4  ;;  %v780_v21 = vmul.f32 %v777_v4, %v760_v45 }
 0x1b8   :  { %793 = dma.vmem_to_hbm [thread:$0]  %s789_s6, 16, %s791_s9, [#allocation6]  }
 0x1b9   :  { %v781_v57 = vsub.f32 %v779_v3, %v780_v21 }
 0x1bb   :  { %782 = vst [vmem:[#allocation10] sm:$0x1] %v781_v57 }
 0x1bc   :  { %804 = dma.vmem_to_hbm [thread:$0]  %s800_s13, 16, %s802_s15, [#allocation11]  }
 0x1bd   :  { %1150 = dma.done.wait [#allocation6], 16  }
 0x1be   :  { %1151 = vsyncadd [#allocation6], 4294967280 }
 0x1bf   :  { %1152 = dma.done.wait [#allocation11], 16  }
 0x1c0   :  { %1153 = vsyncadd [#allocation11], 4294967280 }
 0x1c1   :  { %813 = vsyncpa [#allocation5], 1 }
 0x1c2   :  { %814 = vsyncpa [#allocation8], 1 }
 0x1c3   :  { %815 = vsyncpa [#allocation6], 1 }
 0x1c4   :  { %816 = vsyncpa [#allocation11], 1 }

</bundles_post_ra>
